<compile_context>
chip_gen: v6e
topology: v6e:2x2x1
jax: 0.10.0
libtpu: 0.0.40
codegen_flags: <defaults>
</compile_context>

<pallas_src>
import itertools
from functools import partial

import numpy as np

import jax
import jax.numpy as jnp
from jax import lax
from jax.experimental import pallas as pl
from jax.experimental.pallas import tpu as pltpu

# ---------------------------------------------------------------------------
# Problem constants (synthetic op vocabulary, matches the module's `op_idx`)
# ---------------------------------------------------------------------------
op_idx = {'add': 0, 'sub': 1, 'mul': 2, 'div': 3,
          'pow': 4, 'log': 5, 'exp': 6, 'mod': 7}
NUM_OPS = len(op_idx)       # 8
NUM_EQ_CLASSES = 3          # 'eq' / 'ineq' / other

NEG_INF = -1e30

# Block-size caps, safe on v5e / v6e / v7x (output block f32 double-buffered
# stays <= 8 MiB, well inside the 32 MiB scoped-VMEM default on v7x).
MAX_TN = 512                # rows per block  (multiple of 16: bf16 LHS tile)
MAX_TT = 2048               # lanes per block (multiple of 256: MXU pass width)


def _round_up(x, m):
    return (x + m - 1) // m * m


# ---------------------------------------------------------------------------
# Pallas kernel (one (TN, TT) output block per grid point)
#   inputs :  fused_logits [TN, K_pad] f32  (cols 0..num_ops-1 = op logits,
#                                            cols num_ops..K-1 = eq logits,
#                                            cols K..K_pad-1   = -1e30)
#             table        [K_pad, TT] bf16 (pre-scaled: rows 0..num_ops-1
#                                            = -cost_op * multihot^T,
#                                            rows num_ops..K-1
#                                            = -cost_eq * onehot^T, rest 0)
#   output :  C block      [TN, TT] f32     = fused_softmax @ table
# ---------------------------------------------------------------------------
def make_cost_kernel(num_ops, num_eq):
    def kernel(fused_logits_ref, table_ref, c_ref):
        x = fused_logits_ref[...]                                   # [TN,K] f32
        col = lax.broadcasted_iota(jnp.int32, x.shape, dimension=1)
        is_op = col < num_ops
        is_eq = (col >= num_ops) & (col < num_ops + num_eq)

        # Per-group numerically-stable softmax on the fused operand.  Padded
        # columns hold -1e30 so their exp underflows to 0; padded rows give a
        # harmless uniform softmax (zero table rows / sliced off on device).
        m_op = jnp.max(jnp.where(is_op, x, NEG_INF), axis=-1, keepdims=True)
        m_eq = jnp.max(jnp.where(is_eq, x, NEG_INF), axis=-1, keepdims=True)
        e = jnp.exp(x - jnp.where(is_op, m_op, m_eq))
        d_op = jnp.sum(jnp.where(is_op, e, 0.0), axis=-1, keepdims=True)
        d_eq = jnp.sum(jnp.where(is_eq, e, 0.0), axis=-1, keepdims=True)
        inv = jnp.where(is_op, pl.reciprocal(d_op), pl.reciprocal(d_eq))
        p = (e * inv).astype(jnp.bfloat16)                          # fused probs

        # Single fused bf16 MXU matmul, f32 accumulate; cost weights and the
        # negation are folded into the pre-scaled target table, so this IS
        # the final cost-matrix block.
        c_ref[...] = jnp.dot(p, table_ref[...],
                             preferred_element_type=jnp.float32)
    return kernel


# ---------------------------------------------------------------------------
# Whole device-side path in one jitted executable (padding, table build,
# pallas_call, on-device slice/reshape).
# ---------------------------------------------------------------------------
@partial(jax.jit, static_argnames=("cost_eq", "cost_op"))
def _cost_matrix_device(op_logits, eq_logits, tgt_op_multihot, tgt_eq_idx,
                        cost_eq, cost_op):
    """Returns C with shape [bs, num_queries, total_num_targets] (float32)."""
    bs, nq, num_ops = op_logits.shape
    num_eq = eq_logits.shape[-1]
    N = bs * nq
    T = tgt_eq_idx.shape[0]
    K = num_ops + num_eq

    # --- padded / blocked shapes -------------------------------------------
    K_pad = _round_up(K, 8)                   # tiny K: DMA-bytes saving only
    N16 = _round_up(N, 16)                    # bf16 LHS min tile is (16,128)
    TN = min(MAX_TN, N16)
    N_pad = _round_up(N16, TN)
    T_lane = _round_up(T, 128) if T <= 128 else _round_up(T, 256)
    TT = min(MAX_TT, T_lane)
    T_pad = _round_up(T_lane, TT)
    grid = (N_pad // TN, T_pad // TT)

    # --- fused logits operand [N_pad, K_pad] f32 ----------------------------
    logits = jnp.concatenate(
        [op_logits.reshape(N, num_ops), eq_logits.reshape(N, num_eq)],
        axis=-1).astype(jnp.float32)
    fused = jnp.full((N_pad, K_pad), NEG_INF, jnp.float32)
    fused = fused.at[:N, :K].set(logits)

    # --- fused, pre-scaled target table [K_pad, T_pad] bf16 -----------------
    eq_onehot = jax.nn.one_hot(tgt_eq_idx.astype(jnp.int32), num_eq,
                               dtype=jnp.float32)                   # [T,num_eq]
    table = jnp.zeros((K_pad, T_pad), jnp.float32)
    table = table.at[:num_ops, :T].set(
        (-float(cost_op)) * tgt_op_multihot.astype(jnp.float32).T)
    table = table.at[num_ops:K, :T].set((-float(cost_eq)) * eq_onehot.T)
    table = table.astype(jnp.bfloat16)

    cost_est = pl.CostEstimate(
        flops=2 * N_pad * K_pad * T_pad,
        transcendentals=N_pad * K_pad * grid[1],
        bytes_accessed=(N_pad * K_pad * 4 * grid[1]
                        + K_pad * T_pad * 2 * grid[0]
                        + N_pad * T_pad * 4),
    )

    c_pad = pl.pallas_call(
        make_cost_kernel(num_ops, num_eq),
        out_shape=jax.ShapeDtypeStruct((N_pad, T_pad), jnp.float32),
        grid=grid,
        in_specs=[
            pl.BlockSpec((TN, K_pad), lambda i, j: (i, 0)),
            # Table block is tiny (K_pad*TT bf16 <= 64 KiB), so the default
            # double-buffering waste is negligible; revisit pl.Buffered(1)
            # only if T grows enough to pressure v7x's 64 MiB VMEM.
            pl.BlockSpec((K_pad, TT), lambda i, j: (0, j)),
        ],
        out_specs=pl.BlockSpec((TN, TT), lambda i, j: (i, j)),
        compiler_params=pltpu.CompilerParams(
            dimension_semantics=("parallel", "parallel")),
        cost_estimate=cost_est,
    )(fused, table)

    # Slice / reshape on device, inside the same executable, before the host
    # transfer that feeds the Hungarian assignment.
    return c_pad[:N, :T].reshape(bs, nq, T)


# ---------------------------------------------------------------------------
# Host-side glue (mirrors the PyTorch module's target conversion + matching)
# ---------------------------------------------------------------------------
def convert_eq_to_idx(eq_query_list):
    out = np.zeros(len(eq_query_list), np.int32)
    for i, eq in enumerate(eq_query_list):
        if eq == 'eq':
            out[i] = 0
        elif eq == 'ineq':
            out[i] = 1
        else:
            out[i] = 2
    return out


def build_target_tables(targets):
    tgt_eq = np.concatenate([convert_eq_to_idx(v['eq']) for v in targets])
    cols = []
    for v in targets:
        for op_list in v['op']:
            m = np.zeros(NUM_OPS, np.float32)
            for op in op_list:
                assert op in op_idx
                m[op_idx[op]] += 1.0   # forward() sums probs per op occurrence
            cols.append(m)
    tgt_op = np.stack(cols, axis=0)    # [total_targets, NUM_OPS]
    return tgt_op, tgt_eq


def linear_sum_assignment_small(cost):
    """Brute-force optimal 1-to-1 assignment (rows >= cols, both small)."""
    # TODO(synk): the Hungarian algorithm (scipy.linear_sum_assignment) is
    # inherently sequential / data-dependent and has no clean Pallas mapping;
    # done on host over the Pallas-computed cost matrix.
    cost = np.asarray(cost)
    r, c = cost.shape
    assert r >= c
    best_rows, best_val = None, np.inf
    for perm in itertools.permutations(range(r), c):
        val = sum(cost[perm[j], j] for j in range(c))
        if val < best_val:
            best_val, best_rows = val, perm
    rows = np.array(best_rows, np.int64)
    cols = np.arange(c, dtype=np.int64)
    order = np.argsort(rows)
    return rows[order], cols[order]


def invar_hungarian_matcher(outputs, targets, cost_eq=1.0, cost_op=0.2):
    tgt_op, tgt_eq = build_target_tables(targets)
    C = _cost_matrix_device(outputs['op'], outputs['eq'],
                            jnp.asarray(tgt_op), jnp.asarray(tgt_eq),
                            cost_eq=float(cost_eq), cost_op=float(cost_op))
    C = np.asarray(jax.block_until_ready(C))          # [bs, nq, T_total]

    sizes = [len(v['op']) for v in targets]
    indices, col0 = [], 0
    for i, sz in enumerate(sizes):
        c_i = C[i, :, col0:col0 + sz]
        indices.append(linear_sum_assignment_small(c_i))
        col0 += sz
    return C, indices


# ---------------------------------------------------------------------------
# Reference (numpy, f64) for the cost-matrix hot path, used as a sanity check.
# ---------------------------------------------------------------------------
def reference_cost_matrix(op_logits, eq_logits, tgt_op, tgt_eq,
                          cost_eq=1.0, cost_op=0.2):
    def softmax(x):
        m = x.max(-1, keepdims=True)
        e = np.exp(x - m)
        return e / e.sum(-1, keepdims=True)

    bs, nq, num_ops = op_logits.shape
    out_op = softmax(np.asarray(op_logits, np.float64).reshape(-1, num_ops))
    out_eq = softmax(np.asarray(eq_logits, np.float64).reshape(-1, eq_logits.shape[-1]))
    c_op = -(out_op @ np.asarray(tgt_op, np.float64).T)
    c_eq = -out_eq[:, tgt_eq]
    C = cost_eq * c_eq + cost_op * c_op
    return C.reshape(bs, nq, -1).astype(np.float32)


if __name__ == "__main__":
    bs, num_queries = 2, 8

    key = jax.random.PRNGKey(0)
    k_op, k_eq = jax.random.split(key)
    outputs = {
        'op': jax.random.normal(k_op, (bs, num_queries, NUM_OPS), jnp.float32),
        'eq': jax.random.normal(k_eq, (bs, num_queries, NUM_EQ_CLASSES), jnp.float32),
    }
    targets = [
        {'eq': ['eq', 'ineq', 'other'],
         'op': [['add', 'mul'], ['sub'], ['div', 'pow', 'log']]},
        {'eq': ['ineq', 'eq'],
         'op': [['exp'], ['mod', 'add']]},
    ]

    C, indices = invar_hungarian_matcher(outputs, targets,
                                         cost_eq=1.0, cost_op=0.2)

    # Sanity check of the Pallas-computed cost matrix vs. numpy/f64 reference.
    # bf16 dot operands -> relaxed tolerance (~1e-2).
    tgt_op, tgt_eq = build_target_tables(targets)
    C_ref = reference_cost_matrix(outputs['op'], outputs['eq'], tgt_op, tgt_eq,
                                  cost_eq=1.0, cost_op=0.2)
    assert np.allclose(C, C_ref, atol=1e-2, rtol=1e-2), "cost matrix mismatch"

    for (ri, ci) in indices:
        assert len(ri) == len(ci)

    print("KERNEL_OK")
</pallas_src>

<mosaic_0001>
module attributes {stable_mosaic.version = 11 : i64} {
  func.func @kernel(%arg0: i32, %arg1: i32, %arg2: memref<16x16xf32, #tpu.memory_space<vmem>>, %arg3: memref<16x128xbf16, #tpu.memory_space<vmem>>, %arg4: memref<16x128xf32, #tpu.memory_space<vmem>>) attributes {dimension_semantics = [#tpu.dimension_semantics<parallel>, #tpu.dimension_semantics<parallel>], iteration_bounds = array<i64: 1, 1>, scalar_prefetch = 0 : i64, scratch_operands = 0 : i64, tpu.core_type = #tpu.core_type<tc>, window_params = [{transform_indices = @transform_0, window_bounds = array<i64: 16, 16>}, {transform_indices = @transform_1, window_bounds = array<i64: 16, 128>}, {transform_indices = @transform_2, window_bounds = array<i64: 16, 128>}]} {
    %c0 = arith.constant 0 : index
    %c0_0 = arith.constant 0 : index
    %0 = vector.load %arg2[%c0, %c0_0] : memref<16x16xf32, #tpu.memory_space<vmem>>, vector<16x16xf32>
    %1 = tpu.iota {dimensions = array<i32: 1>} : vector<16x16xi32>
    %c8_i32 = arith.constant 8 : i32
    %2 = vector.broadcast %c8_i32 : i32 to vector<16x16xi32>
    %3 = arith.cmpi slt, %1, %2 : vector<16x16xi32>
    %c8_i32_1 = arith.constant 8 : i32
    %4 = vector.broadcast %c8_i32_1 : i32 to vector<16x16xi32>
    %5 = arith.cmpi sge, %1, %4 : vector<16x16xi32>
    %c11_i32 = arith.constant 11 : i32
    %6 = vector.broadcast %c11_i32 : i32 to vector<16x16xi32>
    %7 = arith.cmpi slt, %1, %6 : vector<16x16xi32>
    %8 = arith.andi %5, %7 : vector<16x16xi1>
    %cst = arith.constant -1.000000e+30 : f32
    %9 = vector.broadcast %cst : f32 to vector<16x16xf32>
    %10 = arith.select %3, %0, %9 : vector<16x16xi1>, vector<16x16xf32>
    %cst_2 = arith.constant dense<0xFF800000> : vector<16xf32>
    %11 = vector.multi_reduction <maximumf>, %10, %cst_2 [1] : vector<16x16xf32> to vector<16xf32>
    %12 = vector.shape_cast %11 : vector<16xf32> to vector<16x1xf32>
    %cst_3 = arith.constant -1.000000e+30 : f32
    %13 = vector.broadcast %cst_3 : f32 to vector<16x16xf32>
    %14 = arith.select %8, %0, %13 : vector<16x16xi1>, vector<16x16xf32>
    %cst_4 = arith.constant dense<0xFF800000> : vector<16xf32>
    %15 = vector.multi_reduction <maximumf>, %14, %cst_4 [1] : vector<16x16xf32> to vector<16xf32>
    %16 = vector.shape_cast %15 : vector<16xf32> to vector<16x1xf32>
    %17 = vector.shape_cast %12 : vector<16x1xf32> to vector<16x1xf32>
    %18 = vector.broadcast %17 : vector<16x1xf32> to vector<16x16xf32>
    %19 = vector.shape_cast %16 : vector<16x1xf32> to vector<16x1xf32>
    %20 = vector.broadcast %19 : vector<16x1xf32> to vector<16x16xf32>
    %21 = arith.select %3, %18, %20 : vector<16x16xi1>, vector<16x16xf32>
    %22 = arith.subf %0, %21 : vector<16x16xf32>
    %23 = math.exp %22 : vector<16x16xf32>
    %cst_5 = arith.constant 0.000000e+00 : f32
    %24 = vector.broadcast %cst_5 : f32 to vector<16x16xf32>
    %25 = arith.select %3, %23, %24 : vector<16x16xi1>, vector<16x16xf32>
    %cst_6 = arith.constant dense<0.000000e+00> : vector<16xf32>
    %26 = vector.multi_reduction <add>, %25, %cst_6 [1] : vector<16x16xf32> to vector<16xf32>
    %27 = vector.shape_cast %26 : vector<16xf32> to vector<16x1xf32>
    %cst_7 = arith.constant 0.000000e+00 : f32
    %28 = vector.broadcast %cst_7 : f32 to vector<16x16xf32>
    %29 = arith.select %8, %23, %28 : vector<16x16xi1>, vector<16x16xf32>
    %cst_8 = arith.constant dense<0.000000e+00> : vector<16xf32>
    %30 = vector.multi_reduction <add>, %29, %cst_8 [1] : vector<16x16xf32> to vector<16xf32>
    %31 = vector.shape_cast %30 : vector<16xf32> to vector<16x1xf32>
    %32 = tpu.reciprocal %27 : vector<16x1xf32> -> vector<16x1xf32>
    %33 = tpu.reciprocal %31 : vector<16x1xf32> -> vector<16x1xf32>
    %34 = vector.shape_cast %32 : vector<16x1xf32> to vector<16x1xf32>
    %35 = vector.broadcast %34 : vector<16x1xf32> to vector<16x16xf32>
    %36 = vector.shape_cast %33 : vector<16x1xf32> to vector<16x1xf32>
    %37 = vector.broadcast %36 : vector<16x1xf32> to vector<16x16xf32>
    %38 = arith.select %3, %35, %37 : vector<16x16xi1>, vector<16x16xf32>
    %39 = arith.mulf %23, %38 : vector<16x16xf32>
    %40 = arith.truncf %39 : vector<16x16xf32> to vector<16x16xbf16>
    %c0_9 = arith.constant 0 : index
    %c0_10 = arith.constant 0 : index
    %41 = vector.load %arg3[%c0_9, %c0_10] : memref<16x128xbf16, #tpu.memory_space<vmem>>, vector<16x128xbf16>
    %cst_11 = arith.constant dense<0.000000e+00> : vector<16x128xf32>
    %42 = tpu.matmul %40, %41, %cst_11 {dimension_numbers = #tpu.dot_dimension_numbers<[1], [0], [0], [1], [0, 0, 1, 1], [], []>} : vector<16x16xbf16>, vector<16x128xbf16>, vector<16x128xf32> -> vector<16x128xf32>
    %c0_12 = arith.constant 0 : index
    %c0_13 = arith.constant 0 : index
    %43 = vector.load %arg4[%c0_12, %c0_13] : memref<16x128xf32, #tpu.memory_space<vmem>>, vector<16x128xf32>
    tpu.vector_store %arg4[%c0_12, %c0_13], %42 {strides = array<i32>} : memref<16x128xf32, #tpu.memory_space<vmem>>, vector<16x128xf32>,
    return
  }
  func.func @transform_0(%arg0: i32, %arg1: i32) -> (i32, i32) {
    %c0_i32 = arith.constant 0 : i32
    %c0_i32_0 = arith.constant 0 : i32
    return %arg0, %c0_i32 : i32, i32
  }
  func.func @transform_1(%arg0: i32, %arg1: i32) -> (i32, i32) {
    %c0_i32 = arith.constant 0 : i32
    %c0_i32_0 = arith.constant 0 : i32
    return %c0_i32, %arg1 : i32, i32
  }
  func.func @transform_2(%arg0: i32, %arg1: i32) -> (i32, i32) {
    %c0_i32 = arith.constant 0 : i32
    return %arg0, %arg1 : i32, i32
  }
}

</mosaic_0001>

<bundles_post_ra>
// kernel: _cost_matrix_device.1
= control target key start
LH: loop header
LB: loop body
LE: loop exit
PB: predicated region body
PF: predicated region fallthrough
CT: control target
= control target key end

     0   :  { %v14_v0 = vlaneseq  ;;  %vm22_vm0 = vcmask 130048   ;;  %v153_v33 = vmov 0.0   ;;  %vm154_vm5 = vmmov 0   ;;  %s227_s0 = inlined_call_operand.vmem [shape: f32[16,16], index: 0, kind: input, shape index: {}]   ;;  %s228_s1 = inlined_call_operand.vmem [shape: bf16[16,128], index: 1, kind: input, shape index: {}]   ;;  %s229_s2 = inlined_call_operand.vmem [shape: f32[16,128], index: 2, kind: output, shape index: {}]  }
   0x1   :  { %v12_v1 = vld [vmem:[%s227_s0] sm:$0xff]  ;;  %v13_v3 = vld [vmem:[%s227_s0 + $0x8] sm:$0xff]  ;;  %132 = vmatprep.subr.bf16.mxu0 %v153_v33  ;;  %134 = vmatprep.mubr.msk.bf16.mxu0 %vm154_vm5, %v153_v33 }
   0x2   :  { %v173_v2 = vand.u32 127, %v14_v0  ;;  %v140_v34 = vld [vmem:[%s228_s1] sm:$0xff]  }
   0x3   :  { %133 = vmatpush3.bf16.msra.mxu0 %v140_v34 }
   0x4   :  { %vm16_vm1 = vcmp.lt.s32.totalorder %v173_v2, 8  ;;  %vm17_vm2 = vcmp.ge.s32.totalorder %v173_v2, 8  ;;  %vm18_vm3 = vcmp.lt.s32.totalorder %v173_v2, 11 }
   0x5   :  { %vm181_vm4 = vmand %vm17_vm2, %vm18_vm3  ;;  %v20_v5 = vsel %vm16_vm1, %v12_v1, -1e+30  ;;  %v21_v6 = vsel %vm16_vm1, %v13_v3, -1e+30 }
   0x6   :  { %v29_v7 = vsel %vm181_vm4, %v12_v1, -1e+30  ;;  %v23_v8 = vsel %vm22_vm0, %v20_v5, -inf  ;;  %v30_v9 = vsel %vm181_vm4, %v13_v3, -1e+30  ;;  %v26_v11 = vsel %vm22_vm0, %v21_v6, -inf }
   0x7   :  { %v31_v10 = vsel %vm22_vm0, %v29_v7, -inf  ;;  %24 = vmax.xlane.f32.xlu0 %v23_v8  ;;  %v34_v12 = vsel %vm22_vm0, %v30_v9, -inf }
   0x8   :  { %32 = vmax.xlane.f32.xlu1 %v31_v10 }
   0xb   :  { %27 = vmax.xlane.f32.xlu0 %v26_v11 }
   0xc   :  { %35 = vmax.xlane.f32.xlu1 %v34_v12 }
  0x90   :  { %v25_v13 = vpop.xlane.xlu0 %24 }
  0x91   :  { %v33_v14 = vpop.xlane.xlu1 %32 }
  0x92   :  { %v37_v15 = vsel %vm16_vm1, %v25_v13, %v33_v14 }
  0x93   :  { %v39_v16 = vsub.f32 %v12_v1, %v37_v15 }
  0x94   :  { %v28_v17 = vpop.xlane.xlu0 %27 }
  0x95   :  { %v41_v18 = vmul.f32 1.442695, %v39_v16  ;;  %v36_v19 = vpop.xlane.xlu1 %35 }
  0x96   :  { %v38_v20 = vsel %vm16_vm1, %v28_v17, %v36_v19 }
  0x97   :  { %141 = vpow2.f32 %v41_v18  ;;  %v40_v21 = vsub.f32 %v13_v3, %v38_v20 }
  0x99   :  { %v43_v22 = vmul.f32 1.442695, %v40_v21 }
  0x9b   :  { %143 = vpow2.f32 %v43_v22 }
  0xa4   :  { %v142_v23 = vpop.eup %141 }
  0xa5   :  { %v45_v24 = vsel %vm16_vm1, %v142_v23, 0.0  ;;  %v53_v26 = vsel %vm181_vm4, %v142_v23, 0.0 }
  0xa6   :  { %v47_v25 = vsel %vm22_vm0, %v45_v24, 0.0  ;;  %v55_v29 = vsel %vm22_vm0, %v53_v26, 0.0 }
  0xa7   :  { %48 = vadd.xlane.f32.xlu0 %v47_v25 }
  0xa8   :  { %v144_v27 = vpop.eup %143 }
  0xa9   :  { %v46_v28 = vsel %vm16_vm1, %v144_v27, 0.0  ;;  %v54_v31 = vsel %vm181_vm4, %v144_v27, 0.0 }
  0xaa   :  { %v50_v30 = vsel %vm22_vm0, %v46_v28, 0.0  ;;  %v58_v32 = vsel %vm22_vm0, %v54_v31, 0.0 }
  0xab   :  { %56 = vadd.xlane.f32.xlu0 %v55_v29  ;;  %51 = vadd.xlane.f32.xlu1 %v50_v30 }
  0xaf   :  { %59 = vadd.xlane.f32.xlu1 %v58_v32 }
 0x130   :  { %v49_v35 = vpop.xlane.xlu0 %48 }
 0x134   :  { %v52_v36 = vpop.xlane.xlu1 %51  ;;  %v57_v37 = vpop.xlane.xlu0 %56 }
 0x135   :  { %145 = vrcp.f32 %v57_v37 }
 0x136   :  { %147 = vrcp.f32 %v49_v35 }
 0x137   :  { %149 = vrcp.f32 %v52_v36 }
 0x138   :  { %v60_v38 = vpop.xlane.xlu1 %59 }
 0x139   :  { %151 = vrcp.f32 %v60_v38 }
 0x142   :  { %v146_v39 = vpop.eup %145 }
 0x143   :  { %v148_v40 = vpop.eup %147 }
 0x144   :  { %v150_v41 = vpop.eup %149  ;;  %v65_v42 = vsel %vm16_vm1, %v148_v40, %v146_v39 }
 0x145   :  { %v67_v45 = vmul.f32 %v142_v23, %v65_v42 }
 0x146   :  { %v152_v43 = vpop.eup %151 }
 0x147   :  { %v66_v44 = vsel %vm16_vm1, %v150_v41, %v152_v43 }
 0x148   :  { %v68_v46 = vmul.f32 %v144_v27, %v66_v44 }
 0x14a   :  { %v69_v47 = vpack.c.bf16 %v68_v46, %v67_v45 }
 0x14c   :  { %135 = vmatmul.mubr.msk.bf16.vlgmr.msra.gmra.mxu0 %vm22_vm0, %v69_v47 }
 0x20c   :  { %v115_v48 = vpop.f32.mrf.mxu0 }
 0x20d   :  { %122 = vst [vmem:[%s229_s2] sm:$0xff] %v115_v48 }
 0x20e   :  { %v136_v49 = vpop.f32.mrf.mxu0 }
 0x210   :  { %v118_v50 = vpop.f32.mrf.mxu0 }
 0x211   :  { %123 = vst [vmem:[%s229_s2 + $0x8] sm:$0xff] %v118_v50 }
 0x212   :  { %v137_v51 = vpop.f32.mrf.mxu0 }

</bundles_post_ra>
